<compile_context>
chip_gen: v7x
topology: tpu7x:2x2x1
jax: 0.10.0
libtpu: 0.0.40
codegen_flags: <defaults>
</compile_context>

<pallas_src>
import functools

import jax
import jax.numpy as jnp
from jax.experimental import pallas as pl
from jax.experimental.pallas import tpu as pltpu


def _round_up(x, m):
    return ((x + m - 1) // m) * m


def _conv_stats_kernel(x_ref, w_ref, b_ref, y_ref, stats_ref, xs_ref, slab_ref,
                       *, d, W, B, Cin):
    """Fused-K dilated 3x3 conv over a batch block + channel sum/sumsq.

    x_ref:     (NB, Cin, H*W)        flattened input block (real channels only)
    w_ref:     (Cout, 9*Cin_p)       taps, row index = (ky*3+kx)*Cin_p + c
    b_ref:     (Cout, 1)
    y_ref:     (NB, Cout, H*W)       conv output (pre-BN), lane-dense
    stats_ref: (1, Cout, 2)          per-program [sum, sumsq] over NB*H*W
    xs_ref:    (NB*Cin_p, S)         VMEM scratch: zero halo + x at lane off B
    slab_ref:  (9*Cin_p, NB*H*W)     VMEM slab holding all 9 masked taps
    """
    NB = x_ref.shape[0]
    HW = x_ref.shape[-1]
    Cin_p = xs_ref.shape[0] // NB
    S = xs_ref.shape[1]

    # Halo-only zeroing: the [B:B+HW] body of the real channel rows is fully
    # overwritten by the x copy below, so only the halos (and the
    # padded-channel body rows, which the taps also read) need clearing.
    xs_ref[:, :B] = jnp.zeros((NB * Cin_p, B), jnp.float32)
    xs_ref[:, B + HW:] = jnp.zeros((NB * Cin_p, S - (B + HW)), jnp.float32)
    for n in range(NB):
        r0 = n * Cin_p
        if Cin_p > Cin:
            xs_ref[r0 + Cin:r0 + Cin_p, B:B + HW] = jnp.zeros(
                (Cin_p - Cin, HW), jnp.float32)
        xs_ref[r0:r0 + Cin, B:B + HW] = x_ref[n]     # lane-aligned (B % 128 == 0)

    # Column-validity masks, built once as (1, HW) and broadcast in the where.
    # The row (H) halo is handled by the zero scratch; only wrap-around across
    # image rows needs masking.
    col = jax.lax.broadcasted_iota(jnp.int32, (1, HW), 1) % W
    mask_l = col >= d                       # tap shifted left  (kx == 0)
    mask_r = col < (W - d)                  # tap shifted right (kx == 2)

    # Build the (9*Cin_p, NB*HW) slab: store each masked tap directly (no
    # concat; bounds vreg live ranges).
    for ky in range(3):
        for kx in range(3):
            t = ky * 3 + kx
            s = (ky - 1) * d * W + (kx - 1) * d
            for n in range(NB):
                r0 = n * Cin_p
                raw = xs_ref[r0:r0 + Cin_p, B + s:B + s + HW]   # (Cin_p, HW)
                if kx == 0:
                    raw = jnp.where(mask_l, raw, 0.0)
                elif kx == 2:
                    raw = jnp.where(mask_r, raw, 0.0)
                slab_ref[t * Cin_p:(t + 1) * Cin_p, n * HW:(n + 1) * HW] = raw

    # Single MXU matmul: fused K = 9*Cin_p, lane-dense N = NB*HW.
    acc = jnp.dot(w_ref[...], slab_ref[...], preferred_element_type=jnp.float32)
    acc = acc + b_ref[...]                                   # (Cout, NB*HW)

    for n in range(NB):
        y_ref[n] = acc[:, n * HW:(n + 1) * HW].astype(y_ref.dtype)

    # Per-program statistics -> the batch-block grid axis can stay 'parallel'.
    s1 = jnp.sum(acc, axis=1, keepdims=True)                 # (Cout, 1)
    s2 = jnp.sum(acc * acc, axis=1, keepdims=True)           # (Cout, 1)
    stats_ref[0] = jnp.concatenate([s1, s2], axis=1)         # (Cout, 2)


def _bn_relu_kernel(y_ref, scale_ref, shift_ref, o_ref):
    """Elementwise affine BN (precomputed scale/shift) + ReLU, lane-dense,
    whole batch block per step, output aliased onto the input buffer."""
    scale = scale_ref[...]                                   # (Cout, 1)
    shift = shift_ref[...]
    for n in range(y_ref.shape[0]):
        o_ref[n] = jnp.maximum(y_ref[n] * scale + shift, 0.0).astype(o_ref.dtype)


@functools.partial(jax.jit, static_argnames=("dilation", "eps"))
def dilated_conv_forward(x_nchw, weight, bias, gamma, beta, dilation=2, eps=1e-5):
    N, Cin, H, W = x_nchw.shape
    Cout = weight.shape[0]
    d = dilation
    assert 0 < d < W, "column-mask logic assumes 0 < dilation < W"
    HW = H * W

    # Whole batch per program at these shapes (amortizes per-step overhead and
    # grows the MXU N dim); generalize via NB if N grows.
    NB = N
    assert N % NB == 0
    nblk = N // NB

    # Channel padding only on the tiny weight tensor; x keeps its real Cin rows
    # (block dim == full array dim, so the (8,128) rule is satisfied).
    Cin_p = max(_round_up(Cin, 8), 8)

    x_flat = x_nchw.reshape(N, Cin, HW).astype(jnp.float32)
    w_p = weight.astype(jnp.float32)
    if Cin_p != Cin:
        w_p = jnp.pad(w_p, ((0, 0), (0, Cin_p - Cin), (0, 0), (0, 0)))
    # (Cout, Cin_p, 3, 3) -> (Cout, 9*Cin_p), row order (ky*3+kx)*Cin_p + c.
    w2 = jnp.transpose(w_p, (0, 2, 3, 1)).reshape(Cout, 9 * Cin_p)
    b2 = bias.reshape(Cout, 1).astype(jnp.float32)

    B = _round_up(d * W + d, 128)             # aligned base offset in scratch
    S = _round_up(B + HW + d * W + d, 128)    # scratch lane extent

    conv_flops = 2 * N * HW * 9 * Cin * Cout
    conv_bytes = 4 * (N * Cin * HW + Cout * 9 * Cin_p + Cout
                      + N * Cout * HW + nblk * Cout * 2)

    conv_fn = pl.pallas_call(
        functools.partial(_conv_stats_kernel, d=d, W=W, B=B, Cin=Cin),
        out_shape=(jax.ShapeDtypeStruct((N, Cout, HW), jnp.float32),
                   jax.ShapeDtypeStruct((nblk, Cout, 2), jnp.float32)),
        grid_spec=pltpu.PrefetchScalarGridSpec(
            num_scalar_prefetch=0,
            grid=(nblk,),
            in_specs=[
                pl.BlockSpec((NB, Cin, HW), lambda g: (g, 0, 0)),
                pl.BlockSpec((Cout, 9 * Cin_p), lambda g: (0, 0)),
                pl.BlockSpec((Cout, 1), lambda g: (0, 0)),
            ],
            out_specs=[
                pl.BlockSpec((NB, Cout, HW), lambda g: (g, 0, 0)),
                pl.BlockSpec((1, Cout, 2), lambda g: (g, 0, 0)),
            ],
            scratch_shapes=[
                pltpu.VMEM((NB * Cin_p, S), jnp.float32),
                pltpu.VMEM((9 * Cin_p, NB * HW), jnp.float32),
            ],
        ),
        compiler_params=pltpu.CompilerParams(
            dimension_semantics=("parallel",)),
        cost_estimate=pl.CostEstimate(flops=conv_flops, transcendentals=0,
                                      bytes_accessed=conv_bytes),
    )
    y, stats = conv_fn(x_flat, w2, b2)

    # BatchNorm2d training-mode statistics (biased variance) from the
    # per-program partial sums.
    # TODO(synk): single-pass sum/sumsq loses precision when |mean| >> std; use
    #             a two-pass/Welford form for production channel counts.
    count = jnp.float32(N * HW)
    tot = jnp.sum(stats, axis=0)                              # (Cout, 2)
    mean = tot[:, 0] / count
    var = jnp.maximum(tot[:, 1] / count - mean * mean, 0.0)
    inv_std = jax.lax.rsqrt(var + eps)
    g32 = gamma.astype(jnp.float32)
    scale = (g32 * inv_std).reshape(Cout, 1)
    shift = (beta.astype(jnp.float32) - mean * g32 * inv_std).reshape(Cout, 1)

    bn_fn = pl.pallas_call(
        _bn_relu_kernel,
        out_shape=jax.ShapeDtypeStruct((N, Cout, HW), jnp.float32),
        grid_spec=pltpu.PrefetchScalarGridSpec(
            num_scalar_prefetch=0,
            grid=(nblk,),
            in_specs=[
                pl.BlockSpec((NB, Cout, HW), lambda g: (g, 0, 0)),
                pl.BlockSpec((Cout, 1), lambda g: (0, 0)),
                pl.BlockSpec((Cout, 1), lambda g: (0, 0)),
            ],
            out_specs=pl.BlockSpec((NB, Cout, HW), lambda g: (g, 0, 0)),
        ),
        compiler_params=pltpu.CompilerParams(
            dimension_semantics=("parallel",)),
        input_output_aliases={0: 0},            # BN+ReLU overwrites y in place
        cost_estimate=pl.CostEstimate(
            flops=3 * N * Cout * HW, transcendentals=0,
            bytes_accessed=4 * (2 * N * Cout * HW + 2 * Cout)),
    )
    out = bn_fn(y, scale, shift)
    return out.reshape(N, Cout, H, W)


def _reference(x, weight, bias, gamma, beta, dilation=2, eps=1e-5):
    """Pure-JAX reference matching PyTorch DilatedConv.forward (training mode)."""
    y = jax.lax.conv_general_dilated(
        x, weight, window_strides=(1, 1),
        padding=((dilation, dilation), (dilation, dilation)),
        rhs_dilation=(dilation, dilation),
        dimension_numbers=('NCHW', 'OIHW', 'NCHW'))
    y = y + bias[None, :, None, None]
    mean = jnp.mean(y, axis=(0, 2, 3), keepdims=True)
    var = jnp.mean((y - mean) ** 2, axis=(0, 2, 3), keepdims=True)
    yn = (y - mean) * jax.lax.rsqrt(var + eps)
    yn = yn * gamma[None, :, None, None] + beta[None, :, None, None]
    return jnp.maximum(yn, 0.0)


if __name__ == "__main__":
    N, Cin, Cout, H, W, dil = 2, 4, 8, 16, 16, 2

    key = jax.random.PRNGKey(0)
    kx, kw, kb, kg, kbeta = jax.random.split(key, 5)

    x = jax.random.normal(kx, (N, Cin, H, W), jnp.float32)
    weight = jax.random.normal(kw, (Cout, Cin, 3, 3), jnp.float32) * 0.2
    bias = jax.random.normal(kb, (Cout,), jnp.float32) * 0.1
    gamma = 1.0 + 0.1 * jax.random.normal(kg, (Cout,), jnp.float32)
    beta = 0.1 * jax.random.normal(kbeta, (Cout,), jnp.float32)

    out = dilated_conv_forward(x, weight, bias, gamma, beta, dilation=dil)
    out = jax.block_until_ready(out)

    ref = _reference(x, weight, bias, gamma, beta, dilation=dil)
    assert out.shape == (N, Cout, H, W)
    assert jnp.allclose(out, ref, atol=5e-3, rtol=5e-3), \
        float(jnp.max(jnp.abs(out - ref)))

    print("KERNEL_OK")
</pallas_src>

<mosaic_0001>
module attributes {stable_mosaic.version = 11 : i64} {
  func.func @_bn_relu_kernel(%arg0: i32, %arg1: memref<2x8x256xf32, #tpu.memory_space<vmem>>, %arg2: memref<8x1xf32, #tpu.memory_space<vmem>>, %arg3: memref<8x1xf32, #tpu.memory_space<vmem>>, %arg4: memref<2x8x256xf32, #tpu.memory_space<vmem>>) attributes {dimension_semantics = [#tpu.dimension_semantics<parallel>], iteration_bounds = array<i64: 1>, scalar_prefetch = 0 : i64, scratch_operands = 0 : i64, tpu.core_type = #tpu.core_type<tc>, window_params = [{transform_indices = @transform_0, window_bounds = array<i64: 2, 8, 256>}, {pipeline_mode = #tpu.pipeline_mode<synchronous>, transform_indices = @transform_1, window_bounds = array<i64: 8, 1>}, {pipeline_mode = #tpu.pipeline_mode<synchronous>, transform_indices = @transform_2, window_bounds = array<i64: 8, 1>}, {transform_indices = @transform_3, window_bounds = array<i64: 2, 8, 256>}]} {
    %c0 = arith.constant 0 : index
    %c0_0 = arith.constant 0 : index
    %0 = vector.load %arg2[%c0, %c0_0] : memref<8x1xf32, #tpu.memory_space<vmem>>, vector<8x1xf32>
    %c0_1 = arith.constant 0 : index
    %c0_2 = arith.constant 0 : index
    %1 = vector.load %arg3[%c0_1, %c0_2] : memref<8x1xf32, #tpu.memory_space<vmem>>, vector<8x1xf32>
    %c0_3 = arith.constant 0 : index
    %c0_4 = arith.constant 0 : index
    %c0_5 = arith.constant 0 : index
    %2 = vector.load %arg1[%c0_3, %c0_4, %c0_5] : memref<2x8x256xf32, #tpu.memory_space<vmem>>, vector<1x8x256xf32>
    %3 = vector.shape_cast %2 : vector<1x8x256xf32> to vector<8x256xf32>
    %4 = vector.broadcast %0 : vector<8x1xf32> to vector<8x256xf32>
    %5 = arith.mulf %3, %4 : vector<8x256xf32>
    %6 = vector.broadcast %1 : vector<8x1xf32> to vector<8x256xf32>
    %7 = arith.addf %5, %6 : vector<8x256xf32>
    %cst = arith.constant 0.000000e+00 : f32
    %8 = vector.broadcast %cst : f32 to vector<8x256xf32>
    %9 = arith.maximumf %7, %8 : vector<8x256xf32>
    %c0_6 = arith.constant 0 : index
    %c0_7 = arith.constant 0 : index
    %c0_8 = arith.constant 0 : index
    %10 = vector.load %arg4[%c0_6, %c0_7, %c0_8] : memref<2x8x256xf32, #tpu.memory_space<vmem>>, vector<1x8x256xf32>
    %11 = vector.shape_cast %10 : vector<1x8x256xf32> to vector<8x256xf32>
    %12 = vector.shape_cast %9 : vector<8x256xf32> to vector<1x8x256xf32>
    tpu.vector_store %arg4[%c0_6, %c0_7, %c0_8], %12 {strides = array<i32>} : memref<2x8x256xf32, #tpu.memory_space<vmem>>, vector<1x8x256xf32>,
    %c1 = arith.constant 1 : index
    %c0_9 = arith.constant 0 : index
    %c0_10 = arith.constant 0 : index
    %13 = vector.load %arg1[%c1, %c0_9, %c0_10] : memref<2x8x256xf32, #tpu.memory_space<vmem>>, vector<1x8x256xf32>
    %14 = vector.shape_cast %13 : vector<1x8x256xf32> to vector<8x256xf32>
    %15 = vector.broadcast %0 : vector<8x1xf32> to vector<8x256xf32>
    %16 = arith.mulf %14, %15 : vector<8x256xf32>
    %17 = vector.broadcast %1 : vector<8x1xf32> to vector<8x256xf32>
    %18 = arith.addf %16, %17 : vector<8x256xf32>
    %cst_11 = arith.constant 0.000000e+00 : f32
    %19 = vector.broadcast %cst_11 : f32 to vector<8x256xf32>
    %20 = arith.maximumf %18, %19 : vector<8x256xf32>
    %c1_12 = arith.constant 1 : index
    %c0_13 = arith.constant 0 : index
    %c0_14 = arith.constant 0 : index
    %21 = vector.load %arg4[%c1_12, %c0_13, %c0_14] : memref<2x8x256xf32, #tpu.memory_space<vmem>>, vector<1x8x256xf32>
    %22 = vector.shape_cast %21 : vector<1x8x256xf32> to vector<8x256xf32>
    %23 = vector.shape_cast %20 : vector<8x256xf32> to vector<1x8x256xf32>
    tpu.vector_store %arg4[%c1_12, %c0_13, %c0_14], %23 {strides = array<i32>} : memref<2x8x256xf32, #tpu.memory_space<vmem>>, vector<1x8x256xf32>,
    return
  }
  func.func @transform_0(%arg0: i32) -> (i32, i32, i32) {
    %c0_i32 = arith.constant 0 : i32
    %c0_i32_0 = arith.constant 0 : i32
    %c0_i32_1 = arith.constant 0 : i32
    return %arg0, %c0_i32, %c0_i32_0 : i32, i32, i32
  }
  func.func @transform_1(%arg0: i32) -> (i32, i32) {
    %c0_i32 = arith.constant 0 : i32
    %c0_i32_0 = arith.constant 0 : i32
    %c0_i32_1 = arith.constant 0 : i32
    return %c0_i32, %c0_i32_0 : i32, i32
  }
  func.func @transform_2(%arg0: i32) -> (i32, i32) {
    %c0_i32 = arith.constant 0 : i32
    %c0_i32_0 = arith.constant 0 : i32
    %c0_i32_1 = arith.constant 0 : i32
    return %c0_i32, %c0_i32_0 : i32, i32
  }
  func.func @transform_3(%arg0: i32) -> (i32, i32, i32) {
    %c0_i32 = arith.constant 0 : i32
    %c0_i32_0 = arith.constant 0 : i32
    %c0_i32_1 = arith.constant 0 : i32
    return %arg0, %c0_i32, %c0_i32_0 : i32, i32, i32
  }
}

module attributes {stable_mosaic.version = 11 : i64} {
  func.func @_conv_stats_kernel(%arg0: i32, %arg1: memref<2x4x256xf32, #tpu.memory_space<vmem>>, %arg2: memref<8x72xf32, #tpu.memory_space<vmem>>, %arg3: memref<8x1xf32, #tpu.memory_space<vmem>>, %arg4: memref<2x8x256xf32, #tpu.memory_space<vmem>>, %arg5: memref<1x8x2xf32, #tpu.memory_space<vmem>>, %arg6: memref<16x512xf32, #tpu.memory_space<vmem>>, %arg7: memref<72x512xf32, #tpu.memory_space<vmem>>) attributes {dimension_semantics = [#tpu.dimension_semantics<parallel>], iteration_bounds = array<i64: 1>, scalar_prefetch = 0 : i64, scratch_operands = 2 : i64, tpu.core_type = #tpu.core_type<tc>, window_params = [{transform_indices = @transform_0, window_bounds = array<i64: 2, 4, 256>}, {pipeline_mode = #tpu.pipeline_mode<synchronous>, transform_indices = @transform_1, window_bounds = array<i64: 8, 72>}, {pipeline_mode = #tpu.pipeline_mode<synchronous>, transform_indices = @transform_2, window_bounds = array<i64: 8, 1>}, {transform_indices = @transform_3, window_bounds = array<i64: 2, 8, 256>}, {transform_indices = @transform_4, window_bounds = array<i64: 1, 8, 2>}]} {
    %cst = arith.constant 0.000000e+00 : f32
    %0 = vector.broadcast %cst : f32 to vector<16x128xf32>
    %c0 = arith.constant 0 : index
    %c0_0 = arith.constant 0 : index
    %1 = vector.load %arg6[%c0, %c0_0] : memref<16x512xf32, #tpu.memory_space<vmem>>, vector<16x128xf32>
    tpu.vector_store %arg6[%c0, %c0_0], %0 {strides = array<i32>} : memref<16x512xf32, #tpu.memory_space<vmem>>, vector<16x128xf32>,
    %cst_1 = arith.constant 0.000000e+00 : f32
    %2 = vector.broadcast %cst_1 : f32 to vector<16x128xf32>
    %c0_2 = arith.constant 0 : index
    %c384 = arith.constant 384 : index
    %3 = vector.load %arg6[%c0_2, %c384] : memref<16x512xf32, #tpu.memory_space<vmem>>, vector<16x128xf32>
    tpu.vector_store %arg6[%c0_2, %c384], %2 {strides = array<i32>} : memref<16x512xf32, #tpu.memory_space<vmem>>, vector<16x128xf32>,
    %cst_3 = arith.constant 0.000000e+00 : f32
    %4 = vector.broadcast %cst_3 : f32 to vector<4x256xf32>
    %c4 = arith.constant 4 : index
    %c128 = arith.constant 128 : index
    %5 = vector.load %arg6[%c4, %c128] : memref<16x512xf32, #tpu.memory_space<vmem>>, vector<4x256xf32>
    tpu.vector_store %arg6[%c4, %c128], %4 {strides = array<i32>} : memref<16x512xf32, #tpu.memory_space<vmem>>, vector<4x256xf32>,
    %c0_4 = arith.constant 0 : index
    %c0_5 = arith.constant 0 : index
    %c0_6 = arith.constant 0 : index
    %6 = vector.load %arg1[%c0_4, %c0_5, %c0_6] : memref<2x4x256xf32, #tpu.memory_space<vmem>>, vector<1x4x256xf32>
    %7 = vector.shape_cast %6 : vector<1x4x256xf32> to vector<4x256xf32>
    %c0_7 = arith.constant 0 : index
    %c128_8 = arith.constant 128 : index
    %8 = vector.load %arg6[%c0_7, %c128_8] : memref<16x512xf32, #tpu.memory_space<vmem>>, vector<4x256xf32>
    tpu.vector_store %arg6[%c0_7, %c128_8], %7 {strides = array<i32>} : memref<16x512xf32, #tpu.memory_space<vmem>>, vector<4x256xf32>,
    %cst_9 = arith.constant 0.000000e+00 : f32
    %9 = vector.broadcast %cst_9 : f32 to vector<4x256xf32>
    %c12 = arith.constant 12 : index
    %c128_10 = arith.constant 128 : index
    %10 = vector.load %arg6[%c12, %c128_10] : memref<16x512xf32, #tpu.memory_space<vmem>>, vector<4x256xf32>
    tpu.vector_store %arg6[%c12, %c128_10], %9 {strides = array<i32>} : memref<16x512xf32, #tpu.memory_space<vmem>>, vector<4x256xf32>,
    %c1 = arith.constant 1 : index
    %c0_11 = arith.constant 0 : index
    %c0_12 = arith.constant 0 : index
    %11 = vector.load %arg1[%c1, %c0_11, %c0_12] : memref<2x4x256xf32, #tpu.memory_space<vmem>>, vector<1x4x256xf32>
    %12 = vector.shape_cast %11 : vector<1x4x256xf32> to vector<4x256xf32>
    %c8 = arith.constant 8 : index
    %c128_13 = arith.constant 128 : index
    %13 = vector.load %arg6[%c8, %c128_13] : memref<16x512xf32, #tpu.memory_space<vmem>>, vector<4x256xf32>
    tpu.vector_store %arg6[%c8, %c128_13], %12 {strides = array<i32>} : memref<16x512xf32, #tpu.memory_space<vmem>>, vector<4x256xf32>,
    %14 = tpu.iota {dimensions = array<i32: 1>} : vector<1x256xi32>
    %c16_i32 = arith.constant 16 : i32
    %c0_i32 = arith.constant 0 : i32
    %15 = arith.cmpi eq, %c16_i32, %c0_i32 : i32
    %c1_i32 = arith.constant 1 : i32
    %16 = arith.select %15, %c1_i32, %c16_i32 : i32
    %17 = vector.broadcast %16 : i32 to vector<1x256xi32>
    %18 = arith.remsi %14, %17 : vector<1x256xi32>
    %c0_i32_14 = arith.constant 0 : i32
    %19 = vector.broadcast %c0_i32_14 : i32 to vector<1x256xi32>
    %20 = arith.cmpi ne, %18, %19 : vector<1x256xi32>
    %c0_i32_15 = arith.constant 0 : i32
    %21 = vector.broadcast %c0_i32_15 : i32 to vector<1x256xi32>
    %22 = arith.cmpi slt, %18, %21 : vector<1x256xi32>
    %c0_i32_16 = arith.constant 0 : i32
    %23 = arith.cmpi slt, %16, %c0_i32_16 : i32
    %24 = vector.broadcast %23 : i1 to vector<1x256xi1>
    %25 = vector.broadcast %24 : vector<1x256xi1> to vector<1x256xi1>
    %26 = arith.xori %22, %25 : vector<1x256xi1>
    %27 = arith.andi %26, %20 : vector<1x256xi1>
    %28 = vector.broadcast %16 : i32 to vector<1x256xi32>
    %29 = arith.addi %18, %28 : vector<1x256xi32>
    %30 = arith.select %27, %29, %18 : vector<1x256xi1>, vector<1x256xi32>
    %c2_i32 = arith.constant 2 : i32
    %31 = vector.broadcast %c2_i32 : i32 to vector<1x256xi32>
    %32 = arith.cmpi sge, %30, %31 : vector<1x256xi32>
    %c14_i32 = arith.constant 14 : i32
    %33 = vector.broadcast %c14_i32 : i32 to vector<1x256xi32>
    %34 = arith.cmpi slt, %30, %33 : vector<1x256xi32>
    %c0_17 = arith.constant 0 : index
    %c94 = arith.constant 94 : index
    %35 = vector.load %arg6[%c0_17, %c94] : memref<16x512xf32, #tpu.memory_space<vmem>>, vector<8x256xf32>
    %cst_18 = arith.constant 0.000000e+00 : f32
    %36 = vector.shape_cast %32 : vector<1x256xi1> to vector<1x256xi1>
    %37 = vector.broadcast %36 : vector<1x256xi1> to vector<8x256xi1>
    %38 = vector.broadcast %cst_18 : f32 to vector<8x256xf32>
    %39 = arith.select %37, %35, %38 : vector<8x256xi1>, vector<8x256xf32>
    %c0_19 = arith.constant 0 : index
    %c0_20 = arith.constant 0 : index
    %40 = vector.load %arg7[%c0_19, %c0_20] : memref<72x512xf32, #tpu.memory_space<vmem>>, vector<8x256xf32>
    tpu.vector_store %arg7[%c0_19, %c0_20], %39 {strides = array<i32>} : memref<72x512xf32, #tpu.memory_space<vmem>>, vector<8x256xf32>,
    %c8_21 = arith.constant 8 : index
    %c94_22 = arith.constant 94 : index
    %41 = vector.load %arg6[%c8_21, %c94_22] : memref<16x512xf32, #tpu.memory_space<vmem>>, vector<8x256xf32>
    %cst_23 = arith.constant 0.000000e+00 : f32
    %42 = vector.shape_cast %32 : vector<1x256xi1> to vector<1x256xi1>
    %43 = vector.broadcast %42 : vector<1x256xi1> to vector<8x256xi1>
    %44 = vector.broadcast %cst_23 : f32 to vector<8x256xf32>
    %45 = arith.select %43, %41, %44 : vector<8x256xi1>, vector<8x256xf32>
    %c0_24 = arith.constant 0 : index
    %c256 = arith.constant 256 : index
    %46 = vector.load %arg7[%c0_24, %c256] : memref<72x512xf32, #tpu.memory_space<vmem>>, vector<8x256xf32>
    tpu.vector_store %arg7[%c0_24, %c256], %45 {strides = array<i32>} : memref<72x512xf32, #tpu.memory_space<vmem>>, vector<8x256xf32>,
    %c0_25 = arith.constant 0 : index
    %c96 = arith.constant 96 : index
    %47 = vector.load %arg6[%c0_25, %c96] : memref<16x512xf32, #tpu.memory_space<vmem>>, vector<8x256xf32>
    %c8_26 = arith.constant 8 : index
    %c0_27 = arith.constant 0 : index
    %48 = vector.load %arg7[%c8_26, %c0_27] : memref<72x512xf32, #tpu.memory_space<vmem>>, vector<8x256xf32>
    tpu.vector_store %arg7[%c8_26, %c0_27], %47 {strides = array<i32>} : memref<72x512xf32, #tpu.memory_space<vmem>>, vector<8x256xf32>,
    %c8_28 = arith.constant 8 : index
    %c96_29 = arith.constant 96 : index
    %49 = vector.load %arg6[%c8_28, %c96_29] : memref<16x512xf32, #tpu.memory_space<vmem>>, vector<8x256xf32>
    %c8_30 = arith.constant 8 : index
    %c256_31 = arith.constant 256 : index
    %50 = vector.load %arg7[%c8_30, %c256_31] : memref<72x512xf32, #tpu.memory_space<vmem>>, vector<8x256xf32>
    tpu.vector_store %arg7[%c8_30, %c256_31], %49 {strides = array<i32>} : memref<72x512xf32, #tpu.memory_space<vmem>>, vector<8x256xf32>,
    %c0_32 = arith.constant 0 : index
    %c98 = arith.constant 98 : index
    %51 = vector.load %arg6[%c0_32, %c98] : memref<16x512xf32, #tpu.memory_space<vmem>>, vector<8x256xf32>
    %cst_33 = arith.constant 0.000000e+00 : f32
    %52 = vector.shape_cast %34 : vector<1x256xi1> to vector<1x256xi1>
    %53 = vector.broadcast %52 : vector<1x256xi1> to vector<8x256xi1>
    %54 = vector.broadcast %cst_33 : f32 to vector<8x256xf32>
    %55 = arith.select %53, %51, %54 : vector<8x256xi1>, vector<8x256xf32>
    %c16 = arith.constant 16 : index
    %c0_34 = arith.constant 0 : index
    %56 = vector.load %arg7[%c16, %c0_34] : memref<72x512xf32, #tpu.memory_space<vmem>>, vector<8x256xf32>
    tpu.vector_store %arg7[%c16, %c0_34], %55 {strides = array<i32>} : memref<72x512xf32, #tpu.memory_space<vmem>>, vector<8x256xf32>,
    %c8_35 = arith.constant 8 : index
    %c98_36 = arith.constant 98 : index
    %57 = vector.load %arg6[%c8_35, %c98_36] : memref<16x512xf32, #tpu.memory_space<vmem>>, vector<8x256xf32>
    %cst_37 = arith.constant 0.000000e+00 : f32
    %58 = vector.shape_cast %34 : vector<1x256xi1> to vector<1x256xi1>
    %59 = vector.broadcast %58 : vector<1x256xi1> to vector<8x256xi1>
    %60 = vector.broadcast %cst_37 : f32 to vector<8x256xf32>
    %61 = arith.select %59, %57, %60 : vector<8x256xi1>, vector<8x256xf32>
    %c16_38 = arith.constant 16 : index
    %c256_39 = arith.constant 256 : index
    %62 = vector.load %arg7[%c16_38, %c256_39] : memref<72x512xf32, #tpu.memory_space<vmem>>, vector<8x256xf32>
    tpu.vector_store %arg7[%c16_38, %c256_39], %61 {strides = array<i32>} : memref<72x512xf32, #tpu.memory_space<vmem>>, vector<8x256xf32>,
    %c0_40 = arith.constant 0 : index
    %c126 = arith.constant 126 : index
    %63 = vector.load %arg6[%c0_40, %c126] : memref<16x512xf32, #tpu.memory_space<vmem>>, vector<8x256xf32>
    %cst_41 = arith.constant 0.000000e+00 : f32
    %64 = vector.shape_cast %32 : vector<1x256xi1> to vector<1x256xi1>
    %65 = vector.broadcast %64 : vector<1x256xi1> to vector<8x256xi1>
    %66 = vector.broadcast %cst_41 : f32 to vector<8x256xf32>
    %67 = arith.select %65, %63, %66 : vector<8x256xi1>, vector<8x256xf32>
    %c24 = arith.constant 24 : index
    %c0_42 = arith.constant 0 : index
    %68 = vector.load %arg7[%c24, %c0_42] : memref<72x512xf32, #tpu.memory_space<vmem>>, vector<8x256xf32>
    tpu.vector_store %arg7[%c24, %c0_42], %67 {strides = array<i32>} : memref<72x512xf32, #tpu.memory_space<vmem>>, vector<8x256xf32>,
    %c8_43 = arith.constant 8 : index
    %c126_44 = arith.constant 126 : index
    %69 = vector.load %arg6[%c8_43, %c126_44] : memref<16x512xf32, #tpu.memory_space<vmem>>, vector<8x256xf32>
    %cst_45 = arith.constant 0.000000e+00 : f32
    %70 = vector.shape_cast %32 : vector<1x256xi1> to vector<1x256xi1>
    %71 = vector.broadcast %70 : vector<1x256xi1> to vector<8x256xi1>
    %72 = vector.broadcast %cst_45 : f32 to vector<8x256xf32>
    %73 = arith.select %71, %69, %72 : vector<8x256xi1>, vector<8x256xf32>
    %c24_46 = arith.constant 24 : index
    %c256_47 = arith.constant 256 : index
    %74 = vector.load %arg7[%c24_46, %c256_47] : memref<72x512xf32, #tpu.memory_space<vmem>>, vector<8x256xf32>
    tpu.vector_store %arg7[%c24_46, %c256_47], %73 {strides = array<i32>} : memref<72x512xf32, #tpu.memory_space<vmem>>, vector<8x256xf32>,
    %c0_48 = arith.constant 0 : index
    %c128_49 = arith.constant 128 : index
    %75 = vector.load %arg6[%c0_48, %c128_49] : memref<16x512xf32, #tpu.memory_space<vmem>>, vector<8x256xf32>
    %c32 = arith.constant 32 : index
    %c0_50 = arith.constant 0 : index
    %76 = vector.load %arg7[%c32, %c0_50] : memref<72x512xf32, #tpu.memory_space<vmem>>, vector<8x256xf32>
    tpu.vector_store %arg7[%c32, %c0_50], %75 {strides = array<i32>} : memref<72x512xf32, #tpu.memory_space<vmem>>, vector<8x256xf32>,
    %c8_51 = arith.constant 8 : index
    %c128_52 = arith.constant 128 : index
    %77 = vector.load %arg6[%c8_51, %c128_52] : memref<16x512xf32, #tpu.memory_space<vmem>>, vector<8x256xf32>
    %c32_53 = arith.constant 32 : index
    %c256_54 = arith.constant 256 : index
    %78 = vector.load %arg7[%c32_53, %c256_54] : memref<72x512xf32, #tpu.memory_space<vmem>>, vector<8x256xf32>
    tpu.vector_store %arg7[%c32_53, %c256_54], %77 {strides = array<i32>} : memref<72x512xf32, #tpu.memory_space<vmem>>, vector<8x256xf32>,
    %c0_55 = arith.constant 0 : index
    %c130 = arith.constant 130 : index
    %79 = vector.load %arg6[%c0_55, %c130] : memref<16x512xf32, #tpu.memory_space<vmem>>, vector<8x256xf32>
    %cst_56 = arith.constant 0.000000e+00 : f32
    %80 = vector.shape_cast %34 : vector<1x256xi1> to vector<1x256xi1>
    %81 = vector.broadcast %80 : vector<1x256xi1> to vector<8x256xi1>
    %82 = vector.broadcast %cst_56 : f32 to vector<8x256xf32>
    %83 = arith.select %81, %79, %82 : vector<8x256xi1>, vector<8x256xf32>
    %c40 = arith.constant 40 : index
    %c0_57 = arith.constant 0 : index
    %84 = vector.load %arg7[%c40, %c0_57] : memref<72x512xf32, #tpu.memory_space<vmem>>, vector<8x256xf32>
    tpu.vector_store %arg7[%c40, %c0_57], %83 {strides = array<i32>} : memref<72x512xf32, #tpu.memory_space<vmem>>, vector<8x256xf32>,
    %c8_58 = arith.constant 8 : index
    %c130_59 = arith.constant 130 : index
    %85 = vector.load %arg6[%c8_58, %c130_59] : memref<16x512xf32, #tpu.memory_space<vmem>>, vector<8x256xf32>
    %cst_60 = arith.constant 0.000000e+00 : f32
    %86 = vector.shape_cast %34 : vector<1x256xi1> to vector<1x256xi1>
    %87 = vector.broadcast %86 : vector<1x256xi1> to vector<8x256xi1>
    %88 = vector.broadcast %cst_60 : f32 to vector<8x256xf32>
    %89 = arith.select %87, %85, %88 : vector<8x256xi1>, vector<8x256xf32>
    %c40_61 = arith.constant 40 : index
    %c256_62 = arith.constant 256 : index
    %90 = vector.load %arg7[%c40_61, %c256_62] : memref<72x512xf32, #tpu.memory_space<vmem>>, vector<8x256xf32>
    tpu.vector_store %arg7[%c40_61, %c256_62], %89 {strides = array<i32>} : memref<72x512xf32, #tpu.memory_space<vmem>>, vector<8x256xf32>,
    %c0_63 = arith.constant 0 : index
    %c158 = arith.constant 158 : index
    %91 = vector.load %arg6[%c0_63, %c158] : memref<16x512xf32, #tpu.memory_space<vmem>>, vector<8x256xf32>
    %cst_64 = arith.constant 0.000000e+00 : f32
    %92 = vector.shape_cast %32 : vector<1x256xi1> to vector<1x256xi1>
    %93 = vector.broadcast %92 : vector<1x256xi1> to vector<8x256xi1>
    %94 = vector.broadcast %cst_64 : f32 to vector<8x256xf32>
    %95 = arith.select %93, %91, %94 : vector<8x256xi1>, vector<8x256xf32>
    %c48 = arith.constant 48 : index
    %c0_65 = arith.constant 0 : index
    %96 = vector.load %arg7[%c48, %c0_65] : memref<72x512xf32, #tpu.memory_space<vmem>>, vector<8x256xf32>
    tpu.vector_store %arg7[%c48, %c0_65], %95 {strides = array<i32>} : memref<72x512xf32, #tpu.memory_space<vmem>>, vector<8x256xf32>,
    %c8_66 = arith.constant 8 : index
    %c158_67 = arith.constant 158 : index
    %97 = vector.load %arg6[%c8_66, %c158_67] : memref<16x512xf32, #tpu.memory_space<vmem>>, vector<8x256xf32>
    %cst_68 = arith.constant 0.000000e+00 : f32
    %98 = vector.shape_cast %32 : vector<1x256xi1> to vector<1x256xi1>
    %99 = vector.broadcast %98 : vector<1x256xi1> to vector<8x256xi1>
    %100 = vector.broadcast %cst_68 : f32 to vector<8x256xf32>
    %101 = arith.select %99, %97, %100 : vector<8x256xi1>, vector<8x256xf32>
    %c48_69 = arith.constant 48 : index
    %c256_70 = arith.constant 256 : index
    %102 = vector.load %arg7[%c48_69, %c256_70] : memref<72x512xf32, #tpu.memory_space<vmem>>, vector<8x256xf32>
    tpu.vector_store %arg7[%c48_69, %c256_70], %101 {strides = array<i32>} : memref<72x512xf32, #tpu.memory_space<vmem>>, vector<8x256xf32>,
    %c0_71 = arith.constant 0 : index
    %c160 = arith.constant 160 : index
    %103 = vector.load %arg6[%c0_71, %c160] : memref<16x512xf32, #tpu.memory_space<vmem>>, vector<8x256xf32>
    %c56 = arith.constant 56 : index
    %c0_72 = arith.constant 0 : index
    %104 = vector.load %arg7[%c56, %c0_72] : memref<72x512xf32, #tpu.memory_space<vmem>>, vector<8x256xf32>
    tpu.vector_store %arg7[%c56, %c0_72], %103 {strides = array<i32>} : memref<72x512xf32, #tpu.memory_space<vmem>>, vector<8x256xf32>,
    %c8_73 = arith.constant 8 : index
    %c160_74 = arith.constant 160 : index
    %105 = vector.load %arg6[%c8_73, %c160_74] : memref<16x512xf32, #tpu.memory_space<vmem>>, vector<8x256xf32>
    %c56_75 = arith.constant 56 : index
    %c256_76 = arith.constant 256 : index
    %106 = vector.load %arg7[%c56_75, %c256_76] : memref<72x512xf32, #tpu.memory_space<vmem>>, vector<8x256xf32>
    tpu.vector_store %arg7[%c56_75, %c256_76], %105 {strides = array<i32>} : memref<72x512xf32, #tpu.memory_space<vmem>>, vector<8x256xf32>,
    %c0_77 = arith.constant 0 : index
    %c162 = arith.constant 162 : index
    %107 = vector.load %arg6[%c0_77, %c162] : memref<16x512xf32, #tpu.memory_space<vmem>>, vector<8x256xf32>
    %cst_78 = arith.constant 0.000000e+00 : f32
    %108 = vector.shape_cast %34 : vector<1x256xi1> to vector<1x256xi1>
    %109 = vector.broadcast %108 : vector<1x256xi1> to vector<8x256xi1>
    %110 = vector.broadcast %cst_78 : f32 to vector<8x256xf32>
    %111 = arith.select %109, %107, %110 : vector<8x256xi1>, vector<8x256xf32>
    %c64 = arith.constant 64 : index
    %c0_79 = arith.constant 0 : index
    %112 = vector.load %arg7[%c64, %c0_79] : memref<72x512xf32, #tpu.memory_space<vmem>>, vector<8x256xf32>
    tpu.vector_store %arg7[%c64, %c0_79], %111 {strides = array<i32>} : memref<72x512xf32, #tpu.memory_space<vmem>>, vector<8x256xf32>,
    %c8_80 = arith.constant 8 : index
    %c162_81 = arith.constant 162 : index
    %113 = vector.load %arg6[%c8_80, %c162_81] : memref<16x512xf32, #tpu.memory_space<vmem>>, vector<8x256xf32>
    %cst_82 = arith.constant 0.000000e+00 : f32
    %114 = vector.shape_cast %34 : vector<1x256xi1> to vector<1x256xi1>
    %115 = vector.broadcast %114 : vector<1x256xi1> to vector<8x256xi1>
    %116 = vector.broadcast %cst_82 : f32 to vector<8x256xf32>
    %117 = arith.select %115, %113, %116 : vector<8x256xi1>, vector<8x256xf32>
    %c64_83 = arith.constant 64 : index
    %c256_84 = arith.constant 256 : index
    %118 = vector.load %arg7[%c64_83, %c256_84] : memref<72x512xf32, #tpu.memory_space<vmem>>, vector<8x256xf32>
    tpu.vector_store %arg7[%c64_83, %c256_84], %117 {strides = array<i32>} : memref<72x512xf32, #tpu.memory_space<vmem>>, vector<8x256xf32>,
    %c0_85 = arith.constant 0 : index
    %c0_86 = arith.constant 0 : index
    %119 = vector.load %arg2[%c0_85, %c0_86] : memref<8x72xf32, #tpu.memory_space<vmem>>, vector<8x72xf32>
    %c0_87 = arith.constant 0 : index
    %c0_88 = arith.constant 0 : index
    %120 = vector.load %arg7[%c0_87, %c0_88] : memref<72x512xf32, #tpu.memory_space<vmem>>, vector<72x512xf32>
    %cst_89 = arith.constant dense<0.000000e+00> : vector<8x512xf32>
    %121 = tpu.matmul %119, %120, %cst_89 {dimension_numbers = #tpu.dot_dimension_numbers<[1], [0], [0], [1], [0, 0, 1, 1], [], []>} : vector<8x72xf32>, vector<72x512xf32>, vector<8x512xf32> -> vector<8x512xf32>
    %c0_90 = arith.constant 0 : index
    %c0_91 = arith.constant 0 : index
    %122 = vector.load %arg3[%c0_90, %c0_91] : memref<8x1xf32, #tpu.memory_space<vmem>>, vector<8x1xf32>
    %123 = vector.broadcast %122 : vector<8x1xf32> to vector<8x512xf32>
    %124 = arith.addf %121, %123 : vector<8x512xf32>
    %125 = vector.extract_strided_slice %124 {offsets = [0, 0], sizes = [8, 256], strides = [1, 1]} : vector<8x512xf32> to vector<8x256xf32>
    %c0_92 = arith.constant 0 : index
    %c0_93 = arith.constant 0 : index
    %c0_94 = arith.constant 0 : index
    %126 = vector.load %arg4[%c0_92, %c0_93, %c0_94] : memref<2x8x256xf32, #tpu.memory_space<vmem>>, vector<1x8x256xf32>
    %127 = vector.shape_cast %126 : vector<1x8x256xf32> to vector<8x256xf32>
    %128 = vector.shape_cast %125 : vector<8x256xf32> to vector<1x8x256xf32>
    tpu.vector_store %arg4[%c0_92, %c0_93, %c0_94], %128 {strides = array<i32>} : memref<2x8x256xf32, #tpu.memory_space<vmem>>, vector<1x8x256xf32>,
    %129 = vector.extract_strided_slice %124 {offsets = [0, 256], sizes = [8, 256], strides = [1, 1]} : vector<8x512xf32> to vector<8x256xf32>
    %c1_95 = arith.constant 1 : index
    %c0_96 = arith.constant 0 : index
    %c0_97 = arith.constant 0 : index
    %130 = vector.load %arg4[%c1_95, %c0_96, %c0_97] : memref<2x8x256xf32, #tpu.memory_space<vmem>>, vector<1x8x256xf32>
    %131 = vector.shape_cast %130 : vector<1x8x256xf32> to vector<8x256xf32>
    %132 = vector.shape_cast %129 : vector<8x256xf32> to vector<1x8x256xf32>
    tpu.vector_store %arg4[%c1_95, %c0_96, %c0_97], %132 {strides = array<i32>} : memref<2x8x256xf32, #tpu.memory_space<vmem>>, vector<1x8x256xf32>,
    %cst_98 = arith.constant dense<0.000000e+00> : vector<8xf32>
    %133 = vector.multi_reduction <add>, %124, %cst_98 [1] : vector<8x512xf32> to vector<8xf32>
    %134 = vector.shape_cast %133 : vector<8xf32> to vector<8x1xf32>
    %135 = arith.mulf %124, %124 : vector<8x512xf32>
    %cst_99 = arith.constant dense<0.000000e+00> : vector<8xf32>
    %136 = vector.multi_reduction <add>, %135, %cst_99 [1] : vector<8x512xf32> to vector<8xf32>
    %137 = vector.shape_cast %136 : vector<8xf32> to vector<8x1xf32>
    %138 = tpu.concatenate %134, %137 in 1 : vector<8x1xf32>, vector<8x1xf32> -> vector<8x2xf32>
    %c0_100 = arith.constant 0 : index
    %c0_101 = arith.constant 0 : index
    %c0_102 = arith.constant 0 : index
    %139 = vector.load %arg5[%c0_100, %c0_101, %c0_102] : memref<1x8x2xf32, #tpu.memory_space<vmem>>, vector<1x8x2xf32>
    %140 = vector.shape_cast %139 : vector<1x8x2xf32> to vector<8x2xf32>
    %141 = vector.shape_cast %138 : vector<8x2xf32> to vector<1x8x2xf32>
    tpu.vector_store %arg5[%c0_100, %c0_101, %c0_102], %141 {strides = array<i32>} : memref<1x8x2xf32, #tpu.memory_space<vmem>>, vector<1x8x2xf32>,
    return
  }
  func.func @transform_0(%arg0: i32) -> (i32, i32, i32) {
    %c0_i32 = arith.constant 0 : i32
    %c0_i32_0 = arith.constant 0 : i32
    %c0_i32_1 = arith.constant 0 : i32
    return %arg0, %c0_i32, %c0_i32_0 : i32, i32, i32
  }
  func.func @transform_1(%arg0: i32) -> (i32, i32) {
    %c0_i32 = arith.constant 0 : i32
    %c0_i32_0 = arith.constant 0 : i32
    %c0_i32_1 = arith.constant 0 : i32
    return %c0_i32, %c0_i32_0 : i32, i32
  }
  func.func @transform_2(%arg0: i32) -> (i32, i32) {
    %c0_i32 = arith.constant 0 : i32
    %c0_i32_0 = arith.constant 0 : i32
    %c0_i32_1 = arith.constant 0 : i32
    return %c0_i32, %c0_i32_0 : i32, i32
  }
  func.func @transform_3(%arg0: i32) -> (i32, i32, i32) {
    %c0_i32 = arith.constant 0 : i32
    %c0_i32_0 = arith.constant 0 : i32
    %c0_i32_1 = arith.constant 0 : i32
    return %arg0, %c0_i32, %c0_i32_0 : i32, i32, i32
  }
  func.func @transform_4(%arg0: i32) -> (i32, i32, i32) {
    %c0_i32 = arith.constant 0 : i32
    %c0_i32_0 = arith.constant 0 : i32
    %c0_i32_1 = arith.constant 0 : i32
    return %arg0, %c0_i32, %c0_i32_0 : i32, i32, i32
  }
}

</mosaic_0001>

<bundles_post_ra>
// kernel: dilated_conv_forward.3
= control target key start
LH: loop header
LB: loop body
LE: loop exit
PB: predicated region body
PF: predicated region fallthrough
CT: control target
= control target key end

     0   :  { %v58_v0 = vmov 0   ;;  %s109_s1 = inlined_call_operand.vmem [shape: f32[8,1], index: 1, kind: input, shape index: {}]   ;;  %s110_s2 = inlined_call_operand.vmem [shape: f32[8,1], index: 2, kind: input, shape index: {}]   ;;  %s111_s0 = inlined_call_operand.vmem [shape: f32[2,8,256], index: 0, kind: input, shape index: {}, may-alias: {0,3}]   ;;  %s112_s3 = inlined_call_operand.vmem [shape: f32[2,8,256], index: 3, kind: output, shape index: {}, may-alias: {0,3}]  }
   0x1   :  { %57 = vset.pattern.permute.xlu0 %v58_v0  ;;  %v14_v1 = vld [vmem:[%s109_s1] sm:$0xff]  ;;  %v17_v5 = vld [vmem:[%s111_s0 + $0x8] sm:$0xff]  ;;  %v52_v6 = vld [vmem:[%s111_s0 + $0x10] sm:$0xff] }
   0x2   :  { %20 = vperm.xlu0 %57, %v14_v1   ;;  %v15_v2 = vld [vmem:[%s110_s2] sm:$0xff]  ;;  %v53_v7 = vld [vmem:[%s111_s0 + $0x18] sm:$0xff] }
   0x3   :  { %v16_v3 = vld [vmem:[%s111_s0] sm:$0xff] }
   0x6   :  { %27 = vperm.xlu0 %57, %v15_v2  }
  0x81   :  { %v21_v4 = vpop.permute.xlu0 %20 }
  0x82   :  { %v23_v8 = vmul.f32 %v21_v4, %v16_v3  ;;  %v24_v9 = vmul.f32 %v21_v4, %v17_v5  ;;  %v39_v10 = vmul.f32 %v52_v6, %v21_v4  ;;  %v40_v11 = vmul.f32 %v53_v7, %v21_v4 }
  0x85   :  { %v28_v12 = vpop.permute.xlu0 %27 }
  0x86   :  { %v30_v13 = vadd.f32 %v28_v12, %v23_v8  ;;  %v31_v14 = vadd.f32 %v28_v12, %v24_v9  ;;  %v41_v15 = vadd.f32 %v39_v10, %v28_v12  ;;  %v42_v16 = vadd.f32 %v40_v11, %v28_v12 }
  0x88   :  { %v32_v17 = vmax.f32 %v30_v13, 0.0  ;;  %v33_v18 = vmax.f32 %v31_v14, 0.0  ;;  %v43_v19 = vmax.f32 %v41_v15, 0.0  ;;  %v44_v20 = vmax.f32 %v42_v16, 0.0 }
  0x8a   :  { %34 = vst [vmem:[%s112_s3] sm:$0xff] %v32_v17  ;;  %35 = vst [vmem:[%s112_s3 + $0x8] sm:$0xff] %v33_v18 }
  0x8b   :  { %54 = vst [vmem:[%s112_s3 + $0x10] sm:$0xff] %v43_v19  ;;  %55 = vst [vmem:[%s112_s3 + $0x18] sm:$0xff] %v44_v20 }

// kernel: dilated_conv_forward.2
= control target key start
LH: loop header
LB: loop body
LE: loop exit
PB: predicated region body
PF: predicated region fallthrough
CT: control target
= control target key end

     0   :  { %v820_v0 = vmov 0.0   ;;  %s821_s19 = smov 34   ;;  %s823_s20 = smov 2   ;;  %v829_v14 = vmov 0   ;;  %v37_v16 = vlaneseq  ;;  %vm84_vm0 = vcmask 277504   ;;  %s1043_s0 = inlined_call_operand.vmem [shape: f32[2,4,256], index: 0, kind: input, shape index: {}]   ;;  %s1044_s2 = inlined_call_operand.vmem [shape: f32[8,1], index: 2, kind: input, shape index: {}]   ;;  %s1045_s1 = inlined_call_operand.vmem [shape: f32[8,72], index: 1, kind: input, shape index: {}]   ;;  %s1046_s3 = inlined_call_operand.vmem [shape: f32[2,8,256], index: 3, kind: output, shape index: {0}]   ;;  %s1047_s4 = inlined_call_operand.vmem [shape: f32[1,8,2], index: 4, kind: output, shape index: {1}]  }
   0x1   :  { %28 = vst [vmem:[#allocation2 + $0x28] sm:$0xf0] %v820_v0  ;;  %v623_v1 = vld [vmem:[%s1043_s0 + $0x8] sm:$0xff]  ;;  %20 = vst [vmem:[#allocation2 + $0x8] sm:$0xf0] %v820_v0  ;;  %v22_v2 = vld [vmem:[%s1043_s0] sm:$0xff]  ;;  %515 = vmatprep.mubr.f32.mxu0 %v820_v0  ;;  %586 = vmatprep.mubr.f32.mxu1 %v820_v0 }
   0x2   :  { %21 = vst [vmem:[#allocation2 + $0x10] sm:$0xf0] %v820_v0  ;;  %29 = vst [vmem:[#allocation2 + $0x30] sm:$0xf0] %v820_v0  ;;  %v33_v3 = vcombine.high %v623_v1, %v623_v1  ;;  %v24_v4 = vcombine.high %v22_v2, %v22_v2  ;;  %s822_s0 = smov 32   ;;  %s824_s21 = smov 30   ;;  %817 = vset.pattern.permute.xlu0 %v829_v14  ;;  %816 = vset.pattern.permute.xlu1 %v829_v14 }
   0x3   :  { %35 = vst [vmem:[#allocation2 + $0x28] sm:$0xf] %v623_v1  ;;  %26 = vst [vmem:[#allocation2 + $0x8] sm:$0xf] %v22_v2  ;;  %s825_s22 = smov 126   ;;  %s826_s23 = smov 98  }
   0x4   :  { %36 = vst [vmem:[#allocation2 + $0x30] sm:$0xf] %v33_v3  ;;  %27 = vst [vmem:[#allocation2 + $0x10] sm:$0xf] %v24_v4  ;;  %s827_s24 = smov 96   ;;  %s828_s25 = smov 94  }
   0x5   :  { %v441_v15 = vld [vmem:[%s1044_s2] sm:$0xff]  ;;  %v38_v17 = vand.u32 127, %v37_v16  ;;  %vm125_vm2 = vcmask 261120   ;;  %vm830_vm4 = vmmov 1   ;;  %vm207_vm7 = vcmask 15360  }
   0x6   :  { %vm166_vm8 = vcmask 244736   ;;  %vm256_vm13 = vcmask 1031168  }
   0x7   :  { %v39_v18 = vadd.s32 128, %v38_v17  ;;  %v44_v22 = vand.u32 15, %v38_v17 }
   0x9   :  { %v51_v21 = vand.u32 15, %v39_v18  ;;  %vm888_vm3 = vcmp.ge.s32.totalorder %v44_v22, 2  ;;  %vm932_vm11 = vcmp.lt.s32.totalorder %v44_v22, 14 }
   0xa   :  { %v862_v5 = vld [vmem:[#allocation2 + $0x28] sm:$0xff]  ;;  %vm906_vm6 = vmpackc.low %vm830_vm4, %vm888_vm3 }
   0xb   :  { %v864_v6 = vld [vmem:[#allocation2 + $0x8] sm:$0xff]  ;;  %v711_v7 = vpack.i.bf16 %v862_v5, %v820_v0  ;;  %v867_v8 = vld [vmem:[#allocation2 + $0x10] sm:$0xff]  ;;  %vm884_vm1 = vcmp.ge.s32.totalorder %v51_v21, 2  ;;  %vm918_vm9 = vcmp.lt.s32.totalorder %v51_v21, 14  ;;  %vm662_vm12 = vmpackc.low %vm888_vm3, %vm932_vm11  ;;  %vm447_vm3 = vcmask 588800  }
   0xc   :  { %v721_v9 = vpack.i.bf16 %v867_v8, %v864_v6  ;;  %v871_v10 = vld [vmem:[#allocation2 + $0x30] sm:$0xff]  ;;  %v771_v13 = vpack.i.bf16 %v820_v0, %v867_v8  ;;  %vm898_vm5 = vmpackc.low %vm830_vm4, %vm884_vm1 }
   0xd   :  { %712 = vrot.lane.b32.xlu1 %v711_v7, %s821_s19  ;;  %v736_v11 = vpack.i.bf16 %v820_v0, %v871_v10  ;;  %v776_v12 = vpack.i.bf16 %v871_v10, %v864_v6  ;;  %vm659_vm10 = vmpackc.low %vm884_vm1, %vm918_vm9  ;;  %vm338_vm1 = vcmask 785408  }
   0xe   :  { %722 = vrot.lane.b32.xlu0 %v721_v9, %s821_s19  ;;  %vm971_vm14 = vmpackc.low %vm918_vm9, %vm830_vm4 }
   0xf   :  { %vm980_vm15 = vmpackc.low %vm932_vm11, %vm830_vm4  ;;  %vm612_vm4 = vcmask 7168  }
  0x11   :  { %717 = vrot.lane.b32.xlu1 %v711_v7, %s822_s0 }
  0x12   :  { %727 = vrot.lane.b32.xlu0 %v721_v9, %s822_s0 }
  0x15   :  { %737 = vrot.lane.b32.xlu1 %v736_v11, %s822_s0 }
  0x16   :  { %732 = vrot.lane.b32.xlu0 %v736_v11, %s821_s19 }
  0x19   :  { %752 = vrot.lane.b32.xlu1 %v721_v9, %s823_s20 }
  0x1a   :  { %742 = vrot.lane.b32.xlu0 %v721_v9, %s824_s21 }
  0x1d   :  { %757 = vrot.lane.b32.xlu1 %v711_v7, %s823_s20 }
  0x1e   :  { %747 = vrot.lane.b32.xlu0 %v711_v7, %s824_s21 }
  0x21   :  { %767 = vrot.lane.b32.xlu1 %v736_v11, %s823_s20 }
  0x22   :  { %762 = vrot.lane.b32.xlu0 %v736_v11, %s824_s21 }
  0x25   :  { %777 = vrot.lane.b32.xlu1 %v776_v12, %s825_s22 }
  0x26   :  { %772 = vrot.lane.b32.xlu0 %v771_v13, %s825_s22 }
  0x29   :  { %787 = vrot.lane.b32.xlu1 %v771_v13, %s826_s23 }
  0x2a   :  { %782 = vrot.lane.b32.xlu0 %v711_v7, %s825_s22 }
  0x2d   :  { %797 = vrot.lane.b32.xlu1 %v776_v12, %s826_s23 }
  0x2e   :  { %792 = vrot.lane.b32.xlu0 %v771_v13, %s827_s24 }
  0x31   :  { %807 = vrot.lane.b32.xlu1 %v711_v7, %s826_s23 }
  0x32   :  { %802 = vrot.lane.b32.xlu0 %v776_v12, %s827_s24 }
  0x35   :  { %371 = vrot.lane.b32.xlu1 %v867_v8, %s828_s25 }
  0x36   :  { %812 = vrot.lane.b32.xlu0 %v711_v7, %s827_s24 }
  0x39   :  { %369 = vrot.lane.b32.xlu1 %v864_v6, %s828_s25 }
  0x3a   :  { %373 = vrot.lane.b32.xlu0 %v820_v0, %s828_s25 }
  0x3d   :  { %394 = vrot.lane.b32.xlu1 %v820_v0, %s828_s25 }
  0x3e   :  { %392 = vrot.lane.b32.xlu0 %v871_v10, %s828_s25 }
  0x41   :  { %444 = vperm.xlu1 %816, %v441_v15  }
  0x42   :  { %390 = vrot.lane.b32.xlu0 %v862_v5, %s828_s25 }
  0x7f   :  { %v713_v19 = vpop.permute.xlu1 %712 }
  0x80   :  { %v723_v20 = vpop.permute.xlu0 %722  ;;  %v714_v23 = vunpack.i.l.bf16 %v713_v19  ;;  %v715_v42 = vunpack.i.h.bf16 %v713_v19 }
  0x81   :  { %v725_v24 = vunpack.i.h.bf16 %v723_v20  ;;  %v724_v25 = vunpack.i.l.bf16 %v723_v20 }
  0x83   :  { %v718_v26 = vpop.permute.xlu1 %717  ;;  %v86_v35 = vsel %vm84_vm0, %v724_v25, %v725_v24  ;;  %v85_v36 = vsel %vm84_vm0, %v714_v23, %v724_v25 }
  0x84   :  { %v719_v27 = vunpack.i.l.bf16 %v718_v26  ;;  %v728_v28 = vpop.permute.xlu0 %727  ;;  %v720_v30 = vunpack.i.h.bf16 %v718_v26 }
  0x85   :  { %v730_v31 = vunpack.i.h.bf16 %v728_v28  ;;  %v729_v32 = vunpack.i.l.bf16 %v728_v28 }
  0x87   :  { %v738_v34 = vpop.permute.xlu1 %737  ;;  %v127_v39 = vsel %vm125_vm2, %v729_v32, %v730_v31  ;;  %v126_v41 = vsel %vm125_vm2, %v719_v27, %v729_v32 }
  0x88   :  { %v740_v37 = vunpack.i.h.bf16 %v738_v34  ;;  %v739_v38 = vunpack.i.l.bf16 %v738_v34  ;;  %v733_v43 = vpop.permute.xlu0 %732  ;;  %v652_v44 = vpack.c.bf16 %v127_v39, %v86_v35  ;;  %v655_v45 = vpack.c.bf16 %v126_v41, %v85_v36 }
  0x89   :  { %v735_v47 = vunpack.i.h.bf16 %v733_v43  ;;  %v734_v48 = vunpack.i.l.bf16 %v733_v43 }
  0x8a   :  { %v145_v49 = vsel %vm125_vm2, %v720_v30, %v739_v38  ;;  %v144_v50 = vsel %vm125_vm2, %v740_v37, %v720_v30  ;;  %654 = vmatprep.subr.msk.bf16.mxu0 %vm898_vm5, %v652_v44  ;;  %vm375_vm2 = vcmask 769024  }
  0x8b   :  { %v753_v51 = vpop.permute.xlu1 %752  ;;  %657 = vmatpush1.bf16.msk.msra.mxu0 %vm906_vm6, %v655_v45  ;;  %v106_v54 = vsel %vm84_vm0, %v715_v42, %v734_v48  ;;  %v105_v55 = vsel %vm84_vm0, %v735_v47, %v715_v42  ;;  %vm297_vm0 = vcmask 801792  }
  0x8c   :  { %v755_v52 = vunpack.i.h.bf16 %v753_v51  ;;  %v754_v53 = vunpack.i.l.bf16 %v753_v51  ;;  %v743_v56 = vpop.permute.xlu0 %742  ;;  %v676_v57 = vpack.c.bf16 %v145_v49, %v106_v54  ;;  %v679_v58 = vpack.c.bf16 %v144_v50, %v105_v55 }
  0x8d   :  { %v745_v61 = vunpack.i.h.bf16 %v743_v56  ;;  %v744_v62 = vunpack.i.l.bf16 %v743_v56 }
  0x8e   :  { %v209_v60 = vsel %vm207_vm7, %v754_v53, %v755_v52  ;;  %678 = vmatprep.subr.msk.bf16.mxu1 %vm898_vm5, %v676_v57 }
  0x8f   :  { %v758_v63 = vpop.permute.xlu1 %757  ;;  %v168_v0 = vsel %vm166_vm8, %v744_v62, %v745_v61  ;;  %681 = vmatpush1.bf16.msk.msra.mxu1 %vm906_vm6, %v679_v58 }
  0x90   :  { %v759_v1 = vunpack.i.l.bf16 %v758_v63  ;;  %v658_v2 = vpack.c.bf16 %v209_v60, %v168_v0  ;;  %v748_v3 = vpop.permute.xlu0 %747  ;;  %v760_v7 = vunpack.i.h.bf16 %v758_v63 }
  0x91   :  { %v749_v11 = vunpack.i.l.bf16 %v748_v3  ;;  %v750_v16 = vunpack.i.h.bf16 %v748_v3 }
  0x92   :  { %v208_v9 = vsel %vm207_vm7, %v759_v1, %v754_v53  ;;  %660 = vmatprep.subr.msk.bf16.mxu0 %vm659_vm10, %v658_v2 }
  0x93   :  { %v768_v12 = vpop.permute.xlu1 %767  ;;  %v167_v13 = vsel %vm166_vm8, %v749_v11, %v744_v62 }
  0x94   :  { %v770_v14 = vunpack.i.h.bf16 %v768_v12  ;;  %v769_v15 = vunpack.i.l.bf16 %v768_v12  ;;  %v661_v17 = vpack.c.bf16 %v208_v9, %v167_v13  ;;  %v763_v18 = vpop.permute.xlu0 %762 }
  0x95   :  { %v765_v21 = vunpack.i.h.bf16 %v763_v18  ;;  %v764_v22 = vunpack.i.l.bf16 %v763_v18 }
  0x96   :  { %v228_v19 = vsel %vm207_vm7, %v770_v14, %v760_v7  ;;  %v229_v20 = vsel %vm207_vm7, %v760_v7, %v769_v15  ;;  %663 = vmatpush1.bf16.msk.msra.mxu0 %vm662_vm12, %v661_v17 }
  0x97   :  { %v778_v23 = vpop.permute.xlu1 %777  ;;  %v187_v24 = vsel %vm166_vm8, %v765_v21, %v750_v16  ;;  %v188_v25 = vsel %vm166_vm8, %v750_v16, %v764_v22 }
  0x98   :  { %v779_v26 = vunpack.i.l.bf16 %v778_v23  ;;  %v682_v27 = vpack.c.bf16 %v229_v20, %v188_v25  ;;  %v685_v28 = vpack.c.bf16 %v228_v19, %v187_v24  ;;  %v773_v30 = vpop.permute.xlu0 %772  ;;  %v780_v35 = vunpack.i.h.bf16 %v778_v23  ;;  %v404_v20 = vld [vmem:[%s1045_s1] sm:$0xff] }
  0x99   :  { %v775_v31 = vunpack.i.h.bf16 %v773_v30  ;;  %v774_v32 = vunpack.i.l.bf16 %v773_v30 }
  0x9a   :  { %684 = vmatprep.subr.msk.bf16.mxu1 %vm659_vm10, %v682_v27 }
  0x9b   :  { %v788_v34 = vpop.permute.xlu1 %787  ;;  %v257_v36 = vsel %vm256_vm13, %v779_v26, %v774_v32  ;;  %v258_v37 = vsel %vm256_vm13, %v774_v32, %v775_v31  ;;  %687 = vmatpush1.bf16.msk.msra.mxu1 %vm662_vm12, %v685_v28 }
  0x9c   :  { %v664_v38 = vpack.c.bf16 %v258_v37, %v867_v8  ;;  %v667_v39 = vpack.c.bf16 %v257_v36, %v864_v6  ;;  %v783_v41 = vpop.permute.xlu0 %782  ;;  %v790_v42 = vunpack.i.h.bf16 %v788_v34  ;;  %v789_v43 = vunpack.i.l.bf16 %v788_v34 }
  0x9d   :  { %v785_v44 = vunpack.i.h.bf16 %v783_v41  ;;  %v784_v45 = vunpack.i.l.bf16 %v783_v41 }
  0x9e   :  { %666 = vmatprep.subr.msk.bf16.mxu0 %vm971_vm14, %v664_v38  ;;  %v299_v51 = vsel %vm297_vm0, %v789_v43, %v790_v42 }
  0x9f   :  { %v798_v47 = vpop.permute.xlu1 %797  ;;  %v277_v8 = vsel %vm256_vm13, %v785_v44, %v780_v35  ;;  %v278_v6 = vsel %vm256_vm13, %v780_v35, %v784_v45  ;;  %669 = vmatpush1.bf16.msk.msra.mxu0 %vm980_vm15, %v667_v39 }
  0xa0   :  { %v691_v48 = vpack.c.bf16 %v277_v8, %v862_v5  ;;  %v688_v49 = vpack.c.bf16 %v278_v6, %v871_v10  ;;  %v793_v50 = vpop.permute.xlu0 %792  ;;  %v799_v55 = vunpack.i.l.bf16 %v798_v47  ;;  %v800_v10 = vunpack.i.h.bf16 %v798_v47 }
  0xa1   :  { %v795_v52 = vunpack.i.h.bf16 %v793_v50  ;;  %v794_v53 = vunpack.i.l.bf16 %v793_v50 }
  0xa2   :  { %690 = vmatprep.subr.msk.bf16.mxu1 %vm971_vm14, %v688_v49  ;;  %v298_v61 = vsel %vm297_vm0, %v799_v55, %v789_v43 }
  0xa3   :  { %v808_v54 = vpop.permute.xlu1 %807  ;;  %v340_v56 = vsel %vm338_vm1, %v794_v53, %v795_v52  ;;  %693 = vmatpush1.bf16.msk.msra.mxu1 %vm980_vm15, %v691_v48 }
  0xa4   :  { %v670_v57 = vpack.c.bf16 %v340_v56, %v299_v51  ;;  %v803_v5 = vpop.permute.xlu0 %802  ;;  %v810_v62 = vunpack.i.h.bf16 %v808_v54  ;;  %v809_v63 = vunpack.i.l.bf16 %v808_v54 }
  0xa5   :  { %v804_v58 = vunpack.i.l.bf16 %v803_v5  ;;  %v805_v3 = vunpack.i.h.bf16 %v803_v5 }
  0xa6   :  { %672 = vmatprep.subr.msk.bf16.mxu0 %vm898_vm5, %v670_v57  ;;  %v318_v12 = vsel %vm297_vm0, %v810_v62, %v800_v10  ;;  %v319_v13 = vsel %vm297_vm0, %v800_v10, %v809_v63 }
  0xa7   :  { %v372_v60 = vpop.permute.xlu1 %371  ;;  %v339_v0 = vsel %vm338_vm1, %v804_v58, %v794_v53 }
  0xa8   :  { %v673_v1 = vpack.c.bf16 %v339_v0, %v298_v61  ;;  %v813_v2 = vpop.permute.xlu0 %812 }
  0xa9   :  { %v815_v7 = vunpack.i.h.bf16 %v813_v2  ;;  %v814_v9 = vunpack.i.l.bf16 %v813_v2 }
  0xaa   :  { %675 = vmatpush1.bf16.msk.msra.mxu0 %vm906_vm6, %v673_v1 }
  0xab   :  { %v370_v11 = vpop.permute.xlu1 %369  ;;  %v357_v14 = vsel %vm338_vm1, %v815_v7, %v805_v3  ;;  %v358_v15 = vsel %vm338_vm1, %v805_v3, %v814_v9 }
  0xac   :  { %v694_v16 = vpack.c.bf16 %v358_v15, %v319_v13  ;;  %v697_v17 = vpack.c.bf16 %v357_v14, %v318_v12  ;;  %v374_v18 = vpop.permute.xlu0 %373  ;;  %v376_v21 = vsel %vm375_vm2, %v370_v11, %v372_v60 }
  0xad   :  { %v377_v19 = vsel %vm375_vm2, %v372_v60, %v374_v18 }
  0xae   :  { %638 = vmatprep.subr.msk.mxu0 %vm918_vm9, %v377_v19  ;;  %696 = vmatprep.subr.msk.bf16.mxu1 %vm898_vm5, %v694_v16 }
  0xaf   :  { %v395_v22 = vpop.permute.xlu1 %394  ;;  %639 = vmatpush1.msk.msra.mxu0 %vm932_vm11, %v376_v21  ;;  %699 = vmatpush1.bf16.msk.msra.mxu1 %vm906_vm6, %v697_v17 }
  0xb0   :  { %v393_v23 = vpop.permute.xlu0 %392  ;;  %624 = vmatmul.mubr.msk.f32.vlgmr.msra.gmra.mrb[0].mxu0 %vm447_vm3, %v404_v20 }
  0xb1   :  { %v397_v24 = vsel %vm375_vm2, %v393_v23, %v395_v22 }
  0xb2   :  { %650 = vmatprep.subr.msk.mxu1 %vm918_vm9, %v397_v24 }
  0xb4   :  { %v391_v25 = vpop.permute.xlu0 %390 }
  0xb5   :  { %v396_v26 = vsel %vm375_vm2, %v391_v25, %v393_v23 }
  0xb6   :  { %651 = vmatpush1.msk.msra.mxu1 %vm932_vm11, %v396_v26 }
  0xb7   :  { %625 = vmatmul.mubr.msk.f32.vlgmr.msra.gmra.mrb[0].mxu1 %vm447_vm3, %v404_v20 }
  0xc0   :  { %v445_v40 = vpop.permute.xlu1 %444 }
 0x183   :  { %v517_v27 = vpop.f32.mrb[0].mxu0 }
 0x184   :  { %v518_v28 = vadd.f32 %v517_v27, %v445_v40  ;;  %v519_v30 = vpop.f32.mrb[1].mxu0 }
 0x185   :  { %v520_v46 = vadd.f32 %v519_v30, %v445_v40 }
 0x186   :  { %593 = vst [vmem:[%s1046_s3] sm:$0xff] %v518_v28  ;;  %v603_v31 = vmul.f32 %v518_v28, %v518_v28 }
 0x187   :  { %594 = vst [vmem:[%s1046_s3 + $0x8] sm:$0xff] %v520_v46  ;;  %v598_v59 = vadd.f32 %v520_v46, %v518_v28  ;;  %v604_v32 = vmul.f32 %v520_v46, %v520_v46 }
 0x189   :  { %v607_v34 = vadd.f32 %v604_v32, %v603_v31 }
 0x18a   :  { %v588_v4 = vpop.f32.mrb[0].mxu1 }
 0x18b   :  { %v589_v35 = vadd.f32 %v588_v4, %v445_v40  ;;  %v590_v36 = vpop.f32.mrb[1].mxu1 }
 0x18c   :  { %v591_v37 = vadd.f32 %v590_v36, %v445_v40 }
 0x18d   :  { %626 = vst [vmem:[%s1046_s3 + $0x10] sm:$0xff] %v589_v35  ;;  %v605_v29 = vmul.f32 %v589_v35, %v589_v35  ;;  %v599_v38 = vadd.f32 %v598_v59, %v589_v35 }
 0x18e   :  { %627 = vst [vmem:[%s1046_s3 + $0x18] sm:$0xff] %v591_v37  ;;  %v606_v39 = vmul.f32 %v591_v37, %v591_v37 }
 0x18f   :  { %v600_v41 = vadd.f32 %v599_v38, %v591_v37  ;;  %v608_v33 = vadd.f32 %v607_v34, %v605_v29 }
 0x191   :  { %601 = vadd.xlane.f32.xlu0 %v600_v41  ;;  %v609_v42 = vadd.f32 %v608_v33, %v606_v39 }
 0x193   :  { %610 = vadd.xlane.f32.xlu1 %v609_v42 }
 0x21e   :  { %v602_v43 = vpop.xlane.xlu0 %601 }
 0x220   :  { %v611_v44 = vpop.xlane.xlu1 %610 }
 0x221   :  { %v613_v45 = vsel %vm612_vm4, %v602_v43, %v611_v44 }
 0x222   :  { %614 = vst.msk [vmem:[%s1047_s4] sm:$0xff] %vm207_vm7, %v613_v45 }

</bundles_post_ra>
